<compile_context>
chip_gen: v5e
topology: v5e:2x2
jax: 0.10.0
libtpu: 0.0.40
codegen_flags: <defaults>
</compile_context>

<pallas_src>
import math
import functools

import jax
import jax.numpy as jnp
from jax import lax
from jax.experimental import pallas as pl
from jax.experimental.pallas import tpu as pltpu

LN_EPS = 1e-5


def _layernorm(x, g_ref, b_ref):
    # f32 LayerNorm over the last dim.
    mean = jnp.mean(x, axis=-1, keepdims=True)
    var = jnp.mean((x - mean) ** 2, axis=-1, keepdims=True)
    xhat = (x - mean) * lax.rsqrt(var + LN_EPS)
    return xhat * g_ref[...] + b_ref[...]


def vit_block_kernel(num_heads, head_dim,
                     x_ref,
                     ln1_g, ln1_b,
                     wqkv_t, bqkv,
                     wo_t, bo,
                     ln2_g, ln2_b,
                     w1_t, b1, w2_t, b2,
                     o_ref,
                     qkv_scr, ctx_scr):
    S = x_ref.shape[1]
    E = x_ref.shape[2]
    H, hd = num_heads, head_dim
    bf16 = jnp.bfloat16

    x = x_ref[0]                                                   # (S, E) f32

    # ---- LayerNorm 1 (f32) + fused, lane-dense QKV projection --------------------
    xn = _layernorm(x, ln1_g, ln1_b)                               # (S, E) f32
    # (S,E) x (E,3E) -> (S,3E), bf16 operands, f32 accumulate.
    # 1/sqrt(hd) already folded into the q columns / bias on the host.
    qkv = jnp.dot(xn.astype(bf16), wqkv_t[...],
                  preferred_element_type=jnp.float32) + bqkv[...]  # (S, 3E) f32

    # ---- relayout (S,3E) -> (3,H,S,hd) bf16 via static slice copies --------------
    for j in range(3):                                             # 0:q 1:k 2:v
        for h in range(H):
            col = j * E + h * hd
            qkv_scr[j, h] = qkv[:, col:col + hd].astype(bf16)

    qh = qkv_scr[0]                                                # (H, S, hd) bf16
    kh = qkv_scr[1]
    vh = qkv_scr[2]

    # ---- scaled-dot-product attention, all heads batched --------------------------
    s = lax.dot_general(qh, kh, (((2,), (2,)), ((0,), (0,))),
                        preferred_element_type=jnp.float32)        # (H, S, S) f32
    s = s - jnp.max(s, axis=-1, keepdims=True)
    p = jnp.exp(s)                                                 # f32 (stable)
    denom = jnp.sum(p, axis=-1, keepdims=True)                     # (H, S, 1) f32
    ctx = lax.dot_general(p.astype(bf16), vh, (((2,), (1,)), ((0,), (0,))),
                          preferred_element_type=jnp.float32)      # (H, S, hd) f32
    # normalize AFTER the PV matmul: (H,S,hd) muls instead of (H,S,S)
    ctx = ctx * pl.reciprocal(denom, approx=True)

    # ---- relayout (H,S,hd) -> (S,E) bf16, then one K=E output projection ----------
    for h in range(H):
        ctx_scr[:, h * hd:(h + 1) * hd] = ctx[h].astype(bf16)

    attn = jnp.dot(ctx_scr[...], wo_t[...],
                   preferred_element_type=jnp.float32) + bo[...]   # (S, E) f32

    x1 = x + attn                                                  # residual 1 (f32)

    # ---- MLP branch: LayerNorm 2 -> Linear -> GELU(exact) -> Linear ---------------
    xn2 = _layernorm(x1, ln2_g, ln2_b)                             # f32
    h1 = jnp.dot(xn2.astype(bf16), w1_t[...],
                 preferred_element_type=jnp.float32) + b1[...]     # (S, Hm) f32
    h1 = 0.5 * h1 * (1.0 + lax.erf(h1 * (1.0 / math.sqrt(2.0))))   # exact GELU, f32
    h2 = jnp.dot(h1.astype(bf16), w2_t[...],
                 preferred_element_type=jnp.float32) + b2[...]     # (S, E) f32

    o_ref[0] = (x1 + h2).astype(o_ref.dtype)                       # residual 2


def prepare_vit_block_params(params, num_heads):
    """One-time (init-time) weight restructuring. Do NOT call per forward step."""
    f32, bf16 = jnp.float32, jnp.bfloat16
    E = params["wo"].shape[0]
    head_dim = E // num_heads
    scale = 1.0 / math.sqrt(head_dim)

    wqkv = params["wqkv"].astype(f32)                  # (3E, E) torch in_proj layout
    bqkv = params["bqkv"].reshape(1, 3 * E).astype(f32)

    # fold 1/sqrt(head_dim) into the q rows of the fused projection (and its bias)
    row_scale = jnp.concatenate([jnp.full((E,), scale, dtype=f32),
                                 jnp.ones((2 * E,), dtype=f32)])
    wqkv_t = (wqkv * row_scale[:, None]).T.astype(bf16)            # (E, 3E) bf16
    bqkv_s = bqkv * row_scale[None, :]                             # (1, 3E) f32

    wo_t = params["wo"].T.astype(bf16)                             # (E, E)  bf16
    w1_t = params["w1"].T.astype(bf16)                             # (E, Hm) bf16
    w2_t = params["w2"].T.astype(bf16)                             # (Hm, E) bf16

    return [
        params["ln1_g"].astype(f32), params["ln1_b"].astype(f32),
        wqkv_t, bqkv_s,
        wo_t, params["bo"].astype(f32),
        params["ln2_g"].astype(f32), params["ln2_b"].astype(f32),
        w1_t, params["b1"].astype(f32),
        w2_t, params["b2"].astype(f32),
    ]


def vit_encoder_block(x, prepared_params, num_heads):
    B, S, E = x.shape
    head_dim = E // num_heads
    Hm = prepared_params[8].shape[1]                   # w1_t is (E, Hm)

    # Grid-invariant weights: whole-array, single-buffered VMEM residents.
    weight_spec = pl.BlockSpec(memory_space=pltpu.MemorySpace.VMEM)

    kernel = functools.partial(vit_block_kernel, num_heads, head_dim)

    # Generation-aware VMEM budget (~85% of physical capacity).
    try:
        vmem_cap = int(pltpu.get_tpu_info().vmem_capacity_bytes)
    except Exception:
        vmem_cap = 128 * 1024 * 1024
    vmem_limit = int(vmem_cap * 0.85)

    flops = B * S * (8 * E * E + 4 * S * E + 4 * E * Hm)
    transcendentals = B * S * (num_heads * S + Hm)
    bytes_accessed = 2 * x.size * 4 + sum(
        int(p.size) * p.dtype.itemsize for p in prepared_params)

    return pl.pallas_call(
        kernel,
        out_shape=jax.ShapeDtypeStruct((B, S, E), x.dtype),
        grid=(B,),
        in_specs=[pl.BlockSpec((1, S, E), lambda b: (b, 0, 0))]
                 + [weight_spec] * len(prepared_params),
        out_specs=pl.BlockSpec((1, S, E), lambda b: (b, 0, 0)),
        scratch_shapes=[
            pltpu.VMEM((3, num_heads, S, head_dim), jnp.bfloat16),  # per-head q/k/v
            pltpu.VMEM((S, E), jnp.bfloat16),                       # packed context
        ],
        compiler_params=pltpu.CompilerParams(
            dimension_semantics=("parallel",),
            vmem_limit_bytes=vmem_limit,
        ),
        cost_estimate=pl.CostEstimate(
            flops=int(flops),
            transcendentals=int(transcendentals),
            bytes_accessed=int(bytes_accessed),
        ),
    )(x, *prepared_params)


def reference(x, params, num_heads):
    B, S, E = x.shape
    hd = E // num_heads

    def ln(v, g, b):
        m = v.mean(-1, keepdims=True)
        var = ((v - m) ** 2).mean(-1, keepdims=True)
        return (v - m) / jnp.sqrt(var + LN_EPS) * g + b

    xn = ln(x, params["ln1_g"], params["ln1_b"])
    qkv = jnp.einsum("bse,fe->bsf", xn, params["wqkv"]) + params["bqkv"]
    q, k, v = jnp.split(qkv, 3, axis=-1)
    q = q.reshape(B, S, num_heads, hd).transpose(0, 2, 1, 3)
    k = k.reshape(B, S, num_heads, hd).transpose(0, 2, 1, 3)
    v = v.reshape(B, S, num_heads, hd).transpose(0, 2, 1, 3)
    scores = jnp.einsum("bhqd,bhkd->bhqk", q, k) / math.sqrt(hd)
    p = jax.nn.softmax(scores, axis=-1)
    ctx = jnp.einsum("bhqk,bhkd->bhqd", p, v).transpose(0, 2, 1, 3).reshape(B, S, E)
    attn = jnp.einsum("bse,fe->bsf", ctx, params["wo"]) + params["bo"]
    x1 = x + attn
    xn2 = ln(x1, params["ln2_g"], params["ln2_b"])
    h1 = jnp.einsum("bse,he->bsh", xn2, params["w1"]) + params["b1"]
    h1 = 0.5 * h1 * (1.0 + lax.erf(h1 / jnp.sqrt(2.0)))
    h2 = jnp.einsum("bsh,eh->bse", h1, params["w2"]) + params["b2"]
    return x1 + h2


if __name__ == "__main__":
    B, S = 2, 8
    E, NUM_HEADS, MLP_RATIO = 32, 4, 4.0
    HID = int(E * MLP_RATIO)

    key = jax.random.PRNGKey(0)
    ks = jax.random.split(key, 16)

    def rnd(k, shape, scale=0.02):
        return (scale * jax.random.normal(k, shape)).astype(jnp.float32)

    params = {
        "ln1_g": 1.0 + rnd(ks[0], (1, E)),
        "ln1_b": rnd(ks[1], (1, E)),
        "wqkv":  rnd(ks[2], (3 * E, E)),
        "bqkv":  rnd(ks[3], (1, 3 * E)),
        "wo":    rnd(ks[4], (E, E)),
        "bo":    rnd(ks[5], (1, E)),
        "ln2_g": 1.0 + rnd(ks[6], (1, E)),
        "ln2_b": rnd(ks[7], (1, E)),
        "w1":    rnd(ks[8], (HID, E)),
        "b1":    rnd(ks[9], (1, HID)),
        "w2":    rnd(ks[10], (E, HID)),
        "b2":    rnd(ks[11], (1, E)),
    }

    x = jax.random.normal(ks[12], (B, S, E), dtype=jnp.float32)

    # Weight restructuring happens once, outside the forward path.
    prepared = prepare_vit_block_params(params, NUM_HEADS)

    out = vit_encoder_block(x, prepared, NUM_HEADS)
    out = jax.block_until_ready(out)

    ref = reference(x, params, NUM_HEADS)
    assert out.shape == (B, S, E)
    # bf16 matmul operands (f32 accumulation) + approx softmax reciprocal -> looser tol.
    max_err = float(jnp.max(jnp.abs(out - ref)))
    assert max_err < 5e-3, max_err

    print("KERNEL_OK")
</pallas_src>

<mosaic_0001>
module attributes {stable_mosaic.version = 11 : i64} {
  func.func @vit_block_kernel(%arg0: i32, %arg1: memref<1x8x32xf32, #tpu.memory_space<vmem>>, %arg2: memref<1x32xf32, #tpu.memory_space<vmem>>, %arg3: memref<1x32xf32, #tpu.memory_space<vmem>>, %arg4: memref<32x96xbf16, #tpu.memory_space<vmem>>, %arg5: memref<1x96xf32, #tpu.memory_space<vmem>>, %arg6: memref<32x32xbf16, #tpu.memory_space<vmem>>, %arg7: memref<1x32xf32, #tpu.memory_space<vmem>>, %arg8: memref<1x32xf32, #tpu.memory_space<vmem>>, %arg9: memref<1x32xf32, #tpu.memory_space<vmem>>, %arg10: memref<32x128xbf16, #tpu.memory_space<vmem>>, %arg11: memref<1x128xf32, #tpu.memory_space<vmem>>, %arg12: memref<128x32xbf16, #tpu.memory_space<vmem>>, %arg13: memref<1x32xf32, #tpu.memory_space<vmem>>, %arg14: memref<1x8x32xf32, #tpu.memory_space<vmem>>, %arg15: memref<3x4x8x8xbf16, #tpu.memory_space<vmem>>, %arg16: memref<8x32xbf16, #tpu.memory_space<vmem>>) attributes {dimension_semantics = [#tpu.dimension_semantics<parallel>], iteration_bounds = array<i64: 2>, scalar_prefetch = 0 : i64, scratch_operands = 2 : i64, tpu.core_type = #tpu.core_type<tc>, window_params = [{transform_indices = @transform_0, window_bounds = array<i64: 1, 8, 32>}, {pipeline_mode = #tpu.pipeline_mode<synchronous>, transform_indices = @transform_1, window_bounds = array<i64: 1, 32>}, {pipeline_mode = #tpu.pipeline_mode<synchronous>, transform_indices = @transform_2, window_bounds = array<i64: 1, 32>}, {pipeline_mode = #tpu.pipeline_mode<synchronous>, transform_indices = @transform_3, window_bounds = array<i64: 32, 96>}, {pipeline_mode = #tpu.pipeline_mode<synchronous>, transform_indices = @transform_4, window_bounds = array<i64: 1, 96>}, {pipeline_mode = #tpu.pipeline_mode<synchronous>, transform_indices = @transform_5, window_bounds = array<i64: 32, 32>}, {pipeline_mode = #tpu.pipeline_mode<synchronous>, transform_indices = @transform_6, window_bounds = array<i64: 1, 32>}, {pipeline_mode = #tpu.pipeline_mode<synchronous>, transform_indices = @transform_7, window_bounds = array<i64: 1, 32>}, {pipeline_mode = #tpu.pipeline_mode<synchronous>, transform_indices = @transform_8, window_bounds = array<i64: 1, 32>}, {pipeline_mode = #tpu.pipeline_mode<synchronous>, transform_indices = @transform_9, window_bounds = array<i64: 32, 128>}, {pipeline_mode = #tpu.pipeline_mode<synchronous>, transform_indices = @transform_10, window_bounds = array<i64: 1, 128>}, {pipeline_mode = #tpu.pipeline_mode<synchronous>, transform_indices = @transform_11, window_bounds = array<i64: 128, 32>}, {pipeline_mode = #tpu.pipeline_mode<synchronous>, transform_indices = @transform_12, window_bounds = array<i64: 1, 32>}, {transform_indices = @transform_13, window_bounds = array<i64: 1, 8, 32>}]} {
    %c0 = arith.constant 0 : index
    %c0_0 = arith.constant 0 : index
    %c0_1 = arith.constant 0 : index
    %0 = vector.load %arg1[%c0, %c0_0, %c0_1] : memref<1x8x32xf32, #tpu.memory_space<vmem>>, vector<1x8x32xf32>
    %1 = vector.shape_cast %0 : vector<1x8x32xf32> to vector<8x32xf32>
    %cst = arith.constant dense<0.000000e+00> : vector<8xf32>
    %2 = vector.multi_reduction <add>, %1, %cst [1] : vector<8x32xf32> to vector<8xf32>
    %3 = vector.shape_cast %2 : vector<8xf32> to vector<8x1xf32>
    %cst_2 = arith.constant 3.200000e+01 : f32
    %4 = vector.broadcast %cst_2 : f32 to vector<8x1xf32>
    %5 = arith.divf %3, %4 : vector<8x1xf32>
    %6 = vector.broadcast %5 : vector<8x1xf32> to vector<8x32xf32>
    %7 = arith.subf %1, %6 : vector<8x32xf32>
    %8 = arith.mulf %7, %7 : vector<8x32xf32>
    %cst_3 = arith.constant dense<0.000000e+00> : vector<8xf32>
    %9 = vector.multi_reduction <add>, %8, %cst_3 [1] : vector<8x32xf32> to vector<8xf32>
    %10 = vector.shape_cast %9 : vector<8xf32> to vector<8x1xf32>
    %cst_4 = arith.constant 3.200000e+01 : f32
    %11 = vector.broadcast %cst_4 : f32 to vector<8x1xf32>
    %12 = arith.divf %10, %11 : vector<8x1xf32>
    %13 = vector.broadcast %5 : vector<8x1xf32> to vector<8x32xf32>
    %14 = arith.subf %1, %13 : vector<8x32xf32>
    %cst_5 = arith.constant 9.99999974E-6 : f32
    %15 = vector.broadcast %cst_5 : f32 to vector<8x1xf32>
    %16 = arith.addf %12, %15 : vector<8x1xf32>
    %17 = math.rsqrt %16 : vector<8x1xf32>
    %18 = vector.broadcast %17 : vector<8x1xf32> to vector<8x32xf32>
    %19 = arith.mulf %14, %18 : vector<8x32xf32>
    %c0_6 = arith.constant 0 : index
    %c0_7 = arith.constant 0 : index
    %20 = vector.load %arg2[%c0_6, %c0_7] : memref<1x32xf32, #tpu.memory_space<vmem>>, vector<1x32xf32>
    %21 = vector.broadcast %20 : vector<1x32xf32> to vector<8x32xf32>
    %22 = arith.mulf %19, %21 : vector<8x32xf32>
    %c0_8 = arith.constant 0 : index
    %c0_9 = arith.constant 0 : index
    %23 = vector.load %arg3[%c0_8, %c0_9] : memref<1x32xf32, #tpu.memory_space<vmem>>, vector<1x32xf32>
    %24 = vector.broadcast %23 : vector<1x32xf32> to vector<8x32xf32>
    %25 = arith.addf %22, %24 : vector<8x32xf32>
    %26 = arith.truncf %25 : vector<8x32xf32> to vector<8x32xbf16>
    %c0_10 = arith.constant 0 : index
    %c0_11 = arith.constant 0 : index
    %27 = vector.load %arg4[%c0_10, %c0_11] : memref<32x96xbf16, #tpu.memory_space<vmem>>, vector<32x96xbf16>
    %cst_12 = arith.constant dense<0.000000e+00> : vector<8x96xf32>
    %28 = tpu.matmul %26, %27, %cst_12 {dimension_numbers = #tpu.dot_dimension_numbers<[1], [0], [0], [1], [0, 0, 1, 1], [], []>} : vector<8x32xbf16>, vector<32x96xbf16>, vector<8x96xf32> -> vector<8x96xf32>
    %c0_13 = arith.constant 0 : index
    %c0_14 = arith.constant 0 : index
    %29 = vector.load %arg5[%c0_13, %c0_14] : memref<1x96xf32, #tpu.memory_space<vmem>>, vector<1x96xf32>
    %30 = vector.broadcast %29 : vector<1x96xf32> to vector<8x96xf32>
    %31 = arith.addf %28, %30 : vector<8x96xf32>
    %32 = vector.extract_strided_slice %31 {offsets = [0, 0], sizes = [8, 8], strides = [1, 1]} : vector<8x96xf32> to vector<8x8xf32>
    %33 = arith.truncf %32 : vector<8x8xf32> to vector<8x8xbf16>
    %c0_15 = arith.constant 0 : index
    %c0_16 = arith.constant 0 : index
    %c0_17 = arith.constant 0 : index
    %c0_18 = arith.constant 0 : index
    %34 = vector.load %arg15[%c0_15, %c0_16, %c0_17, %c0_18] : memref<3x4x8x8xbf16, #tpu.memory_space<vmem>>, vector<1x1x8x8xbf16>
    %35 = vector.shape_cast %34 : vector<1x1x8x8xbf16> to vector<8x8xbf16>
    %36 = vector.shape_cast %33 : vector<8x8xbf16> to vector<1x1x8x8xbf16>
    tpu.vector_store %arg15[%c0_15, %c0_16, %c0_17, %c0_18], %36 {strides = array<i32>} : memref<3x4x8x8xbf16, #tpu.memory_space<vmem>>, vector<1x1x8x8xbf16>,
    %37 = vector.extract_strided_slice %31 {offsets = [0, 8], sizes = [8, 8], strides = [1, 1]} : vector<8x96xf32> to vector<8x8xf32>
    %38 = arith.truncf %37 : vector<8x8xf32> to vector<8x8xbf16>
    %c0_19 = arith.constant 0 : index
    %c1 = arith.constant 1 : index
    %c0_20 = arith.constant 0 : index
    %c0_21 = arith.constant 0 : index
    %39 = vector.load %arg15[%c0_19, %c1, %c0_20, %c0_21] : memref<3x4x8x8xbf16, #tpu.memory_space<vmem>>, vector<1x1x8x8xbf16>
    %40 = vector.shape_cast %39 : vector<1x1x8x8xbf16> to vector<8x8xbf16>
    %41 = vector.shape_cast %38 : vector<8x8xbf16> to vector<1x1x8x8xbf16>
    tpu.vector_store %arg15[%c0_19, %c1, %c0_20, %c0_21], %41 {strides = array<i32>} : memref<3x4x8x8xbf16, #tpu.memory_space<vmem>>, vector<1x1x8x8xbf16>,
    %42 = vector.extract_strided_slice %31 {offsets = [0, 16], sizes = [8, 8], strides = [1, 1]} : vector<8x96xf32> to vector<8x8xf32>
    %43 = arith.truncf %42 : vector<8x8xf32> to vector<8x8xbf16>
    %c0_22 = arith.constant 0 : index
    %c2 = arith.constant 2 : index
    %c0_23 = arith.constant 0 : index
    %c0_24 = arith.constant 0 : index
    %44 = vector.load %arg15[%c0_22, %c2, %c0_23, %c0_24] : memref<3x4x8x8xbf16, #tpu.memory_space<vmem>>, vector<1x1x8x8xbf16>
    %45 = vector.shape_cast %44 : vector<1x1x8x8xbf16> to vector<8x8xbf16>
    %46 = vector.shape_cast %43 : vector<8x8xbf16> to vector<1x1x8x8xbf16>
    tpu.vector_store %arg15[%c0_22, %c2, %c0_23, %c0_24], %46 {strides = array<i32>} : memref<3x4x8x8xbf16, #tpu.memory_space<vmem>>, vector<1x1x8x8xbf16>,
    %47 = vector.extract_strided_slice %31 {offsets = [0, 24], sizes = [8, 8], strides = [1, 1]} : vector<8x96xf32> to vector<8x8xf32>
    %48 = arith.truncf %47 : vector<8x8xf32> to vector<8x8xbf16>
    %c0_25 = arith.constant 0 : index
    %c3 = arith.constant 3 : index
    %c0_26 = arith.constant 0 : index
    %c0_27 = arith.constant 0 : index
    %49 = vector.load %arg15[%c0_25, %c3, %c0_26, %c0_27] : memref<3x4x8x8xbf16, #tpu.memory_space<vmem>>, vector<1x1x8x8xbf16>
    %50 = vector.shape_cast %49 : vector<1x1x8x8xbf16> to vector<8x8xbf16>
    %51 = vector.shape_cast %48 : vector<8x8xbf16> to vector<1x1x8x8xbf16>
    tpu.vector_store %arg15[%c0_25, %c3, %c0_26, %c0_27], %51 {strides = array<i32>} : memref<3x4x8x8xbf16, #tpu.memory_space<vmem>>, vector<1x1x8x8xbf16>,
    %52 = vector.extract_strided_slice %31 {offsets = [0, 32], sizes = [8, 8], strides = [1, 1]} : vector<8x96xf32> to vector<8x8xf32>
    %53 = arith.truncf %52 : vector<8x8xf32> to vector<8x8xbf16>
    %c1_28 = arith.constant 1 : index
    %c0_29 = arith.constant 0 : index
    %c0_30 = arith.constant 0 : index
    %c0_31 = arith.constant 0 : index
    %54 = vector.load %arg15[%c1_28, %c0_29, %c0_30, %c0_31] : memref<3x4x8x8xbf16, #tpu.memory_space<vmem>>, vector<1x1x8x8xbf16>
    %55 = vector.shape_cast %54 : vector<1x1x8x8xbf16> to vector<8x8xbf16>
    %56 = vector.shape_cast %53 : vector<8x8xbf16> to vector<1x1x8x8xbf16>
    tpu.vector_store %arg15[%c1_28, %c0_29, %c0_30, %c0_31], %56 {strides = array<i32>} : memref<3x4x8x8xbf16, #tpu.memory_space<vmem>>, vector<1x1x8x8xbf16>,
    %57 = vector.extract_strided_slice %31 {offsets = [0, 40], sizes = [8, 8], strides = [1, 1]} : vector<8x96xf32> to vector<8x8xf32>
    %58 = arith.truncf %57 : vector<8x8xf32> to vector<8x8xbf16>
    %c1_32 = arith.constant 1 : index
    %c1_33 = arith.constant 1 : index
    %c0_34 = arith.constant 0 : index
    %c0_35 = arith.constant 0 : index
    %59 = vector.load %arg15[%c1_32, %c1_33, %c0_34, %c0_35] : memref<3x4x8x8xbf16, #tpu.memory_space<vmem>>, vector<1x1x8x8xbf16>
    %60 = vector.shape_cast %59 : vector<1x1x8x8xbf16> to vector<8x8xbf16>
    %61 = vector.shape_cast %58 : vector<8x8xbf16> to vector<1x1x8x8xbf16>
    tpu.vector_store %arg15[%c1_32, %c1_33, %c0_34, %c0_35], %61 {strides = array<i32>} : memref<3x4x8x8xbf16, #tpu.memory_space<vmem>>, vector<1x1x8x8xbf16>,
    %62 = vector.extract_strided_slice %31 {offsets = [0, 48], sizes = [8, 8], strides = [1, 1]} : vector<8x96xf32> to vector<8x8xf32>
    %63 = arith.truncf %62 : vector<8x8xf32> to vector<8x8xbf16>
    %c1_36 = arith.constant 1 : index
    %c2_37 = arith.constant 2 : index
    %c0_38 = arith.constant 0 : index
    %c0_39 = arith.constant 0 : index
    %64 = vector.load %arg15[%c1_36, %c2_37, %c0_38, %c0_39] : memref<3x4x8x8xbf16, #tpu.memory_space<vmem>>, vector<1x1x8x8xbf16>
    %65 = vector.shape_cast %64 : vector<1x1x8x8xbf16> to vector<8x8xbf16>
    %66 = vector.shape_cast %63 : vector<8x8xbf16> to vector<1x1x8x8xbf16>
    tpu.vector_store %arg15[%c1_36, %c2_37, %c0_38, %c0_39], %66 {strides = array<i32>} : memref<3x4x8x8xbf16, #tpu.memory_space<vmem>>, vector<1x1x8x8xbf16>,
    %67 = vector.extract_strided_slice %31 {offsets = [0, 56], sizes = [8, 8], strides = [1, 1]} : vector<8x96xf32> to vector<8x8xf32>
    %68 = arith.truncf %67 : vector<8x8xf32> to vector<8x8xbf16>
    %c1_40 = arith.constant 1 : index
    %c3_41 = arith.constant 3 : index
    %c0_42 = arith.constant 0 : index
    %c0_43 = arith.constant 0 : index
    %69 = vector.load %arg15[%c1_40, %c3_41, %c0_42, %c0_43] : memref<3x4x8x8xbf16, #tpu.memory_space<vmem>>, vector<1x1x8x8xbf16>
    %70 = vector.shape_cast %69 : vector<1x1x8x8xbf16> to vector<8x8xbf16>
    %71 = vector.shape_cast %68 : vector<8x8xbf16> to vector<1x1x8x8xbf16>
    tpu.vector_store %arg15[%c1_40, %c3_41, %c0_42, %c0_43], %71 {strides = array<i32>} : memref<3x4x8x8xbf16, #tpu.memory_space<vmem>>, vector<1x1x8x8xbf16>,
    %72 = vector.extract_strided_slice %31 {offsets = [0, 64], sizes = [8, 8], strides = [1, 1]} : vector<8x96xf32> to vector<8x8xf32>
    %73 = arith.truncf %72 : vector<8x8xf32> to vector<8x8xbf16>
    %c2_44 = arith.constant 2 : index
    %c0_45 = arith.constant 0 : index
    %c0_46 = arith.constant 0 : index
    %c0_47 = arith.constant 0 : index
    %74 = vector.load %arg15[%c2_44, %c0_45, %c0_46, %c0_47] : memref<3x4x8x8xbf16, #tpu.memory_space<vmem>>, vector<1x1x8x8xbf16>
    %75 = vector.shape_cast %74 : vector<1x1x8x8xbf16> to vector<8x8xbf16>
    %76 = vector.shape_cast %73 : vector<8x8xbf16> to vector<1x1x8x8xbf16>
    tpu.vector_store %arg15[%c2_44, %c0_45, %c0_46, %c0_47], %76 {strides = array<i32>} : memref<3x4x8x8xbf16, #tpu.memory_space<vmem>>, vector<1x1x8x8xbf16>,
    %77 = vector.extract_strided_slice %31 {offsets = [0, 72], sizes = [8, 8], strides = [1, 1]} : vector<8x96xf32> to vector<8x8xf32>
    %78 = arith.truncf %77 : vector<8x8xf32> to vector<8x8xbf16>
    %c2_48 = arith.constant 2 : index
    %c1_49 = arith.constant 1 : index
    %c0_50 = arith.constant 0 : index
    %c0_51 = arith.constant 0 : index
    %79 = vector.load %arg15[%c2_48, %c1_49, %c0_50, %c0_51] : memref<3x4x8x8xbf16, #tpu.memory_space<vmem>>, vector<1x1x8x8xbf16>
    %80 = vector.shape_cast %79 : vector<1x1x8x8xbf16> to vector<8x8xbf16>
    %81 = vector.shape_cast %78 : vector<8x8xbf16> to vector<1x1x8x8xbf16>
    tpu.vector_store %arg15[%c2_48, %c1_49, %c0_50, %c0_51], %81 {strides = array<i32>} : memref<3x4x8x8xbf16, #tpu.memory_space<vmem>>, vector<1x1x8x8xbf16>,
    %82 = vector.extract_strided_slice %31 {offsets = [0, 80], sizes = [8, 8], strides = [1, 1]} : vector<8x96xf32> to vector<8x8xf32>
    %83 = arith.truncf %82 : vector<8x8xf32> to vector<8x8xbf16>
    %c2_52 = arith.constant 2 : index
    %c2_53 = arith.constant 2 : index
    %c0_54 = arith.constant 0 : index
    %c0_55 = arith.constant 0 : index
    %84 = vector.load %arg15[%c2_52, %c2_53, %c0_54, %c0_55] : memref<3x4x8x8xbf16, #tpu.memory_space<vmem>>, vector<1x1x8x8xbf16>
    %85 = vector.shape_cast %84 : vector<1x1x8x8xbf16> to vector<8x8xbf16>
    %86 = vector.shape_cast %83 : vector<8x8xbf16> to vector<1x1x8x8xbf16>
    tpu.vector_store %arg15[%c2_52, %c2_53, %c0_54, %c0_55], %86 {strides = array<i32>} : memref<3x4x8x8xbf16, #tpu.memory_space<vmem>>, vector<1x1x8x8xbf16>,
    %87 = vector.extract_strided_slice %31 {offsets = [0, 88], sizes = [8, 8], strides = [1, 1]} : vector<8x96xf32> to vector<8x8xf32>
    %88 = arith.truncf %87 : vector<8x8xf32> to vector<8x8xbf16>
    %c2_56 = arith.constant 2 : index
    %c3_57 = arith.constant 3 : index
    %c0_58 = arith.constant 0 : index
    %c0_59 = arith.constant 0 : index
    %89 = vector.load %arg15[%c2_56, %c3_57, %c0_58, %c0_59] : memref<3x4x8x8xbf16, #tpu.memory_space<vmem>>, vector<1x1x8x8xbf16>
    %90 = vector.shape_cast %89 : vector<1x1x8x8xbf16> to vector<8x8xbf16>
    %91 = vector.shape_cast %88 : vector<8x8xbf16> to vector<1x1x8x8xbf16>
    tpu.vector_store %arg15[%c2_56, %c3_57, %c0_58, %c0_59], %91 {strides = array<i32>} : memref<3x4x8x8xbf16, #tpu.memory_space<vmem>>, vector<1x1x8x8xbf16>,
    %c0_60 = arith.constant 0 : index
    %c0_61 = arith.constant 0 : index
    %c0_62 = arith.constant 0 : index
    %c0_63 = arith.constant 0 : index
    %92 = vector.load %arg15[%c0_60, %c0_61, %c0_62, %c0_63] : memref<3x4x8x8xbf16, #tpu.memory_space<vmem>>, vector<1x4x8x8xbf16>
    %93 = vector.shape_cast %92 : vector<1x4x8x8xbf16> to vector<4x8x8xbf16>
    %c1_64 = arith.constant 1 : index
    %c0_65 = arith.constant 0 : index
    %c0_66 = arith.constant 0 : index
    %c0_67 = arith.constant 0 : index
    %94 = vector.load %arg15[%c1_64, %c0_65, %c0_66, %c0_67] : memref<3x4x8x8xbf16, #tpu.memory_space<vmem>>, vector<1x4x8x8xbf16>
    %95 = vector.shape_cast %94 : vector<1x4x8x8xbf16> to vector<4x8x8xbf16>
    %c2_68 = arith.constant 2 : index
    %c0_69 = arith.constant 0 : index
    %c0_70 = arith.constant 0 : index
    %c0_71 = arith.constant 0 : index
    %96 = vector.load %arg15[%c2_68, %c0_69, %c0_70, %c0_71] : memref<3x4x8x8xbf16, #tpu.memory_space<vmem>>, vector<1x4x8x8xbf16>
    %97 = vector.shape_cast %96 : vector<1x4x8x8xbf16> to vector<4x8x8xbf16>
    %cst_72 = arith.constant dense<0.000000e+00> : vector<4x8x8xf32>
    %98 = tpu.matmul %93, %95, %cst_72 {dimension_numbers = #tpu.dot_dimension_numbers<[2], [2], [1], [1], [0, 0, 0, 1, 1, 1], [0], [0]>} : vector<4x8x8xbf16>, vector<4x8x8xbf16>, vector<4x8x8xf32> -> vector<4x8x8xf32>
    %cst_73 = arith.constant dense<0xFF800000> : vector<4x8xf32>
    %99 = vector.multi_reduction <maximumf>, %98, %cst_73 [2] : vector<4x8x8xf32> to vector<4x8xf32>
    %100 = vector.shape_cast %99 : vector<4x8xf32> to vector<4x8x1xf32>
    %101 = vector.broadcast %100 : vector<4x8x1xf32> to vector<4x8x8xf32>
    %102 = arith.subf %98, %101 : vector<4x8x8xf32>
    %103 = math.exp %102 : vector<4x8x8xf32>
    %cst_74 = arith.constant dense<0.000000e+00> : vector<4x8xf32>
    %104 = vector.multi_reduction <add>, %103, %cst_74 [2] : vector<4x8x8xf32> to vector<4x8xf32>
    %105 = vector.shape_cast %104 : vector<4x8xf32> to vector<4x8x1xf32>
    %106 = arith.truncf %103 : vector<4x8x8xf32> to vector<4x8x8xbf16>
    %cst_75 = arith.constant dense<0.000000e+00> : vector<4x8x8xf32>
    %107 = tpu.matmul %106, %97, %cst_75 {dimension_numbers = #tpu.dot_dimension_numbers<[2], [1], [1], [2], [0, 0, 0, 1, 1, 2], [0], [0]>} : vector<4x8x8xbf16>, vector<4x8x8xbf16>, vector<4x8x8xf32> -> vector<4x8x8xf32>
    %108 = tpu.reciprocal %105 {approx = true} : vector<4x8x1xf32> -> vector<4x8x1xf32>
    %109 = vector.broadcast %108 : vector<4x8x1xf32> to vector<4x8x8xf32>
    %110 = arith.mulf %107, %109 : vector<4x8x8xf32>
    %111 = vector.extract_strided_slice %110 {offsets = [0, 0, 0], sizes = [1, 8, 8], strides = [1, 1, 1]} : vector<4x8x8xf32> to vector<1x8x8xf32>
    %112 = vector.shape_cast %111 : vector<1x8x8xf32> to vector<8x8xf32>
    %113 = arith.truncf %112 : vector<8x8xf32> to vector<8x8xbf16>
    %c0_76 = arith.constant 0 : index
    %c0_77 = arith.constant 0 : index
    %114 = vector.load %arg16[%c0_76, %c0_77] : memref<8x32xbf16, #tpu.memory_space<vmem>>, vector<8x8xbf16>
    tpu.vector_store %arg16[%c0_76, %c0_77], %113 {strides = array<i32>} : memref<8x32xbf16, #tpu.memory_space<vmem>>, vector<8x8xbf16>,
    %115 = vector.extract_strided_slice %110 {offsets = [1, 0, 0], sizes = [1, 8, 8], strides = [1, 1, 1]} : vector<4x8x8xf32> to vector<1x8x8xf32>
    %116 = vector.shape_cast %115 : vector<1x8x8xf32> to vector<8x8xf32>
    %117 = arith.truncf %116 : vector<8x8xf32> to vector<8x8xbf16>
    %c0_78 = arith.constant 0 : index
    %c8 = arith.constant 8 : index
    %118 = vector.load %arg16[%c0_78, %c8] : memref<8x32xbf16, #tpu.memory_space<vmem>>, vector<8x8xbf16>
    tpu.vector_store %arg16[%c0_78, %c8], %117 {strides = array<i32>} : memref<8x32xbf16, #tpu.memory_space<vmem>>, vector<8x8xbf16>,
    %119 = vector.extract_strided_slice %110 {offsets = [2, 0, 0], sizes = [1, 8, 8], strides = [1, 1, 1]} : vector<4x8x8xf32> to vector<1x8x8xf32>
    %120 = vector.shape_cast %119 : vector<1x8x8xf32> to vector<8x8xf32>
    %121 = arith.truncf %120 : vector<8x8xf32> to vector<8x8xbf16>
    %c0_79 = arith.constant 0 : index
    %c16 = arith.constant 16 : index
    %122 = vector.load %arg16[%c0_79, %c16] : memref<8x32xbf16, #tpu.memory_space<vmem>>, vector<8x8xbf16>
    tpu.vector_store %arg16[%c0_79, %c16], %121 {strides = array<i32>} : memref<8x32xbf16, #tpu.memory_space<vmem>>, vector<8x8xbf16>,
    %123 = vector.extract_strided_slice %110 {offsets = [3, 0, 0], sizes = [1, 8, 8], strides = [1, 1, 1]} : vector<4x8x8xf32> to vector<1x8x8xf32>
    %124 = vector.shape_cast %123 : vector<1x8x8xf32> to vector<8x8xf32>
    %125 = arith.truncf %124 : vector<8x8xf32> to vector<8x8xbf16>
    %c0_80 = arith.constant 0 : index
    %c24 = arith.constant 24 : index
    %126 = vector.load %arg16[%c0_80, %c24] : memref<8x32xbf16, #tpu.memory_space<vmem>>, vector<8x8xbf16>
    tpu.vector_store %arg16[%c0_80, %c24], %125 {strides = array<i32>} : memref<8x32xbf16, #tpu.memory_space<vmem>>, vector<8x8xbf16>,
    %c0_81 = arith.constant 0 : index
    %c0_82 = arith.constant 0 : index
    %127 = vector.load %arg16[%c0_81, %c0_82] : memref<8x32xbf16, #tpu.memory_space<vmem>>, vector<8x32xbf16>
    %c0_83 = arith.constant 0 : index
    %c0_84 = arith.constant 0 : index
    %128 = vector.load %arg6[%c0_83, %c0_84] : memref<32x32xbf16, #tpu.memory_space<vmem>>, vector<32x32xbf16>
    %cst_85 = arith.constant dense<0.000000e+00> : vector<8x32xf32>
    %129 = tpu.matmul %127, %128, %cst_85 {dimension_numbers = #tpu.dot_dimension_numbers<[1], [0], [0], [1], [0, 0, 1, 1], [], []>} : vector<8x32xbf16>, vector<32x32xbf16>, vector<8x32xf32> -> vector<8x32xf32>
    %c0_86 = arith.constant 0 : index
    %c0_87 = arith.constant 0 : index
    %130 = vector.load %arg7[%c0_86, %c0_87] : memref<1x32xf32, #tpu.memory_space<vmem>>, vector<1x32xf32>
    %131 = vector.broadcast %130 : vector<1x32xf32> to vector<8x32xf32>
    %132 = arith.addf %129, %131 : vector<8x32xf32>
    %133 = arith.addf %1, %132 : vector<8x32xf32>
    %cst_88 = arith.constant dense<0.000000e+00> : vector<8xf32>
    %134 = vector.multi_reduction <add>, %133, %cst_88 [1] : vector<8x32xf32> to vector<8xf32>
    %135 = vector.shape_cast %134 : vector<8xf32> to vector<8x1xf32>
    %cst_89 = arith.constant 3.200000e+01 : f32
    %136 = vector.broadcast %cst_89 : f32 to vector<8x1xf32>
    %137 = arith.divf %135, %136 : vector<8x1xf32>
    %138 = vector.broadcast %137 : vector<8x1xf32> to vector<8x32xf32>
    %139 = arith.subf %133, %138 : vector<8x32xf32>
    %140 = arith.mulf %139, %139 : vector<8x32xf32>
    %cst_90 = arith.constant dense<0.000000e+00> : vector<8xf32>
    %141 = vector.multi_reduction <add>, %140, %cst_90 [1] : vector<8x32xf32> to vector<8xf32>
    %142 = vector.shape_cast %141 : vector<8xf32> to vector<8x1xf32>
    %cst_91 = arith.constant 3.200000e+01 : f32
    %143 = vector.broadcast %cst_91 : f32 to vector<8x1xf32>
    %144 = arith.divf %142, %143 : vector<8x1xf32>
    %145 = vector.broadcast %137 : vector<8x1xf32> to vector<8x32xf32>
    %146 = arith.subf %133, %145 : vector<8x32xf32>
    %cst_92 = arith.constant 9.99999974E-6 : f32
    %147 = vector.broadcast %cst_92 : f32 to vector<8x1xf32>
    %148 = arith.addf %144, %147 : vector<8x1xf32>
    %149 = math.rsqrt %148 : vector<8x1xf32>
    %150 = vector.broadcast %149 : vector<8x1xf32> to vector<8x32xf32>
    %151 = arith.mulf %146, %150 : vector<8x32xf32>
    %c0_93 = arith.constant 0 : index
    %c0_94 = arith.constant 0 : index
    %152 = vector.load %arg8[%c0_93, %c0_94] : memref<1x32xf32, #tpu.memory_space<vmem>>, vector<1x32xf32>
    %153 = vector.broadcast %152 : vector<1x32xf32> to vector<8x32xf32>
    %154 = arith.mulf %151, %153 : vector<8x32xf32>
    %c0_95 = arith.constant 0 : index
    %c0_96 = arith.constant 0 : index
    %155 = vector.load %arg9[%c0_95, %c0_96] : memref<1x32xf32, #tpu.memory_space<vmem>>, vector<1x32xf32>
    %156 = vector.broadcast %155 : vector<1x32xf32> to vector<8x32xf32>
    %157 = arith.addf %154, %156 : vector<8x32xf32>
    %158 = arith.truncf %157 : vector<8x32xf32> to vector<8x32xbf16>
    %c0_97 = arith.constant 0 : index
    %c0_98 = arith.constant 0 : index
    %159 = vector.load %arg10[%c0_97, %c0_98] : memref<32x128xbf16, #tpu.memory_space<vmem>>, vector<32x128xbf16>
    %cst_99 = arith.constant dense<0.000000e+00> : vector<8x128xf32>
    %160 = tpu.matmul %158, %159, %cst_99 {dimension_numbers = #tpu.dot_dimension_numbers<[1], [0], [0], [1], [0, 0, 1, 1], [], []>} : vector<8x32xbf16>, vector<32x128xbf16>, vector<8x128xf32> -> vector<8x128xf32>
    %c0_100 = arith.constant 0 : index
    %c0_101 = arith.constant 0 : index
    %161 = vector.load %arg11[%c0_100, %c0_101] : memref<1x128xf32, #tpu.memory_space<vmem>>, vector<1x128xf32>
    %162 = vector.broadcast %161 : vector<1x128xf32> to vector<8x128xf32>
    %163 = arith.addf %160, %162 : vector<8x128xf32>
    %cst_102 = arith.constant 5.000000e-01 : f32
    %164 = vector.broadcast %cst_102 : f32 to vector<8x128xf32>
    %165 = arith.mulf %164, %163 : vector<8x128xf32>
    %cst_103 = arith.constant 0.707106769 : f32
    %166 = vector.broadcast %cst_103 : f32 to vector<8x128xf32>
    %167 = arith.mulf %163, %166 : vector<8x128xf32>
    %168 = math.erf %167 : vector<8x128xf32>
    %cst_104 = arith.constant 1.000000e+00 : f32
    %169 = vector.broadcast %cst_104 : f32 to vector<8x128xf32>
    %170 = arith.addf %169, %168 : vector<8x128xf32>
    %171 = arith.mulf %165, %170 : vector<8x128xf32>
    %172 = arith.truncf %171 : vector<8x128xf32> to vector<8x128xbf16>
    %c0_105 = arith.constant 0 : index
    %c0_106 = arith.constant 0 : index
    %173 = vector.load %arg12[%c0_105, %c0_106] : memref<128x32xbf16, #tpu.memory_space<vmem>>, vector<128x32xbf16>
    %cst_107 = arith.constant dense<0.000000e+00> : vector<8x32xf32>
    %174 = tpu.matmul %172, %173, %cst_107 {dimension_numbers = #tpu.dot_dimension_numbers<[1], [0], [0], [1], [0, 0, 1, 1], [], []>} : vector<8x128xbf16>, vector<128x32xbf16>, vector<8x32xf32> -> vector<8x32xf32>
    %c0_108 = arith.constant 0 : index
    %c0_109 = arith.constant 0 : index
    %175 = vector.load %arg13[%c0_108, %c0_109] : memref<1x32xf32, #tpu.memory_space<vmem>>, vector<1x32xf32>
    %176 = vector.broadcast %175 : vector<1x32xf32> to vector<8x32xf32>
    %177 = arith.addf %174, %176 : vector<8x32xf32>
    %178 = arith.addf %133, %177 : vector<8x32xf32>
    %c0_110 = arith.constant 0 : index
    %c0_111 = arith.constant 0 : index
    %c0_112 = arith.constant 0 : index
    %179 = vector.load %arg14[%c0_110, %c0_111, %c0_112] : memref<1x8x32xf32, #tpu.memory_space<vmem>>, vector<1x8x32xf32>
    %180 = vector.shape_cast %179 : vector<1x8x32xf32> to vector<8x32xf32>
    %181 = vector.shape_cast %178 : vector<8x32xf32> to vector<1x8x32xf32>
    tpu.vector_store %arg14[%c0_110, %c0_111, %c0_112], %181 {strides = array<i32>} : memref<1x8x32xf32, #tpu.memory_space<vmem>>, vector<1x8x32xf32>,
    return
  }
  func.func @transform_0(%arg0: i32) -> (i32, i32, i32) {
    %c0_i32 = arith.constant 0 : i32
    %c0_i32_0 = arith.constant 0 : i32
    %c0_i32_1 = arith.constant 0 : i32
    return %arg0, %c0_i32, %c0_i32_0 : i32, i32, i32
  }
  func.func @transform_1(%arg0: i32) -> (i32, i32) {
    %c0_i32 = arith.constant 0 : i32
    %c0_i32_0 = arith.constant 0 : i32
    %c0_i32_1 = arith.constant 0 : i32
    return %c0_i32, %c0_i32_0 : i32, i32
  }
  func.func @transform_2(%arg0: i32) -> (i32, i32) {
    %c0_i32 = arith.constant 0 : i32
    %c0_i32_0 = arith.constant 0 : i32
    %c0_i32_1 = arith.constant 0 : i32
    return %c0_i32, %c0_i32_0 : i32, i32
  }
  func.func @transform_3(%arg0: i32) -> (i32, i32) {
    %c0_i32 = arith.constant 0 : i32
    %c0_i32_0 = arith.constant 0 : i32
    %c0_i32_1 = arith.constant 0 : i32
    return %c0_i32, %c0_i32_0 : i32, i32
  }
  func.func @transform_4(%arg0: i32) -> (i32, i32) {
    %c0_i32 = arith.constant 0 : i32
    %c0_i32_0 = arith.constant 0 : i32
    %c0_i32_1 = arith.constant 0 : i32
    return %c0_i32, %c0_i32_0 : i32, i32
  }
  func.func @transform_5(%arg0: i32) -> (i32, i32) {
    %c0_i32 = arith.constant 0 : i32
    %c0_i32_0 = arith.constant 0 : i32
    %c0_i32_1 = arith.constant 0 : i32
    return %c0_i32, %c0_i32_0 : i32, i32
  }
  func.func @transform_6(%arg0: i32) -> (i32, i32) {
    %c0_i32 = arith.constant 0 : i32
    %c0_i32_0 = arith.constant 0 : i32
    %c0_i32_1 = arith.constant 0 : i32
    return %c0_i32, %c0_i32_0 : i32, i32
  }
  func.func @transform_7(%arg0: i32) -> (i32, i32) {
    %c0_i32 = arith.constant 0 : i32
    %c0_i32_0 = arith.constant 0 : i32
    %c0_i32_1 = arith.constant 0 : i32
    return %c0_i32, %c0_i32_0 : i32, i32
  }
  func.func @transform_8(%arg0: i32) -> (i32, i32) {
    %c0_i32 = arith.constant 0 : i32
    %c0_i32_0 = arith.constant 0 : i32
    %c0_i32_1 = arith.constant 0 : i32
    return %c0_i32, %c0_i32_0 : i32, i32
  }
  func.func @transform_9(%arg0: i32) -> (i32, i32) {
    %c0_i32 = arith.constant 0 : i32
    %c0_i32_0 = arith.constant 0 : i32
    %c0_i32_1 = arith.constant 0 : i32
    return %c0_i32, %c0_i32_0 : i32, i32
  }
  func.func @transform_10(%arg0: i32) -> (i32, i32) {
    %c0_i32 = arith.constant 0 : i32
    %c0_i32_0 = arith.constant 0 : i32
    %c0_i32_1 = arith.constant 0 : i32
    return %c0_i32, %c0_i32_0 : i32, i32
  }
  func.func @transform_11(%arg0: i32) -> (i32, i32) {
    %c0_i32 = arith.constant 0 : i32
    %c0_i32_0 = arith.constant 0 : i32
    %c0_i32_1 = arith.constant 0 : i32
    return %c0_i32, %c0_i32_0 : i32, i32
  }
  func.func @transform_12(%arg0: i32) -> (i32, i32) {
    %c0_i32 = arith.constant 0 : i32
    %c0_i32_0 = arith.constant 0 : i32
    %c0_i32_1 = arith.constant 0 : i32
    return %c0_i32, %c0_i32_0 : i32, i32
  }
  func.func @transform_13(%arg0: i32) -> (i32, i32, i32) {
    %c0_i32 = arith.constant 0 : i32
    %c0_i32_0 = arith.constant 0 : i32
    %c0_i32_1 = arith.constant 0 : i32
    return %arg0, %c0_i32, %c0_i32_0 : i32, i32, i32
  }
}

</mosaic_0001>

<bundles_post_ra>
// kernel: tpu_custom_call.1
= control target key start
LH: loop header
LB: loop body
LE: loop exit
PB: predicated region body
PF: predicated region fallthrough
CT: control target
= control target key end

     0   :  { %s1674_s0 = inlined_call_operand.vmem [shape: f32[2,8,32], index: 0, kind: input, shape index: {}]   ;;  %s1675_s1 = inlined_call_operand.vmem [shape: f32[1,32], index: 1, kind: input, shape index: {}]   ;;  %s1676_s2 = inlined_call_operand.vmem [shape: f32[1,32], index: 2, kind: input, shape index: {}]   ;;  %s1677_s3 = inlined_call_operand.vmem [shape: bf16[32,96], index: 3, kind: input, shape index: {}]   ;;  %s1678_s4 = inlined_call_operand.vmem [shape: f32[1,96], index: 4, kind: input, shape index: {}]   ;;  %s1679_s5 = inlined_call_operand.vmem [shape: bf16[32,32], index: 5, kind: input, shape index: {}]   ;;  %s1680_s6 = inlined_call_operand.vmem [shape: f32[1,32], index: 6, kind: input, shape index: {}]   ;;  %s1681_s7 = inlined_call_operand.vmem [shape: f32[1,32], index: 7, kind: input, shape index: {}]   ;;  %s1682_s8 = inlined_call_operand.vmem [shape: f32[1,32], index: 8, kind: input, shape index: {}]   ;;  %s1683_s9 = inlined_call_operand.vmem [shape: bf16[32,128], index: 9, kind: input, shape index: {}]   ;;  %s1684_s10 = inlined_call_operand.vmem [shape: f32[1,128], index: 10, kind: input, shape index: {}]   ;;  %s1685_s11 = inlined_call_operand.vmem [shape: bf16[128,32], index: 11, kind: input, shape index: {}]   ;;  %s1686_s12 = inlined_call_operand.vmem [shape: f32[1,32], index: 12, kind: input, shape index: {}]   ;;  %s1687_s13 = inlined_call_operand.hbm [shape: f32[2,8,32], index: 13, kind: output, shape index: {}]  }
   0x1   :  { %1688 = sst [smem:[#allocation7_spill]] %s1674_s0 }
   0x2   :  { %1689 = sst [smem:[#allocation8_spill]] %s1675_s1 }
   0x3   :  { %1690 = sst [smem:[#allocation9_spill]] %s1676_s2 }
   0x4   :  { %1691 = sst [smem:[#allocation10_spill]] %s1677_s3 }
   0x5   :  { %18 = vsyncpa [#allocation5], 0 }
   0x6   :  { %20 = vsyncpa [#allocation5 + $0x1], 0  ;;  %s1448_s25 = smov 0   ;;  %s1450_s26 = smov 0  }
   0x7   :  { %s1452_s27 = smov 0   ;;  %s1454_s28 = smov 0  }
   0x8 LB: > { %s1469_s29 = sadd.s32 4294967295, %s1361_s28   ;;  %s1121_s30 = sadd.s32 4294967294, %s1361_s28   ;;  %s1361_s28 = sphi %s1454_s28, %s1701_s28   ;;  %s1357_s27 = sphi %s1452_s27, %s1700_s27   ;;  %s1353_s26 = sphi %s1450_s26, %s1699_s26   ;;  %s1349_s25 = sphi %s1448_s25, %s1698_s25  }
   0x9   : > { %s1473_s14 = sadd.s32 1, %s1361_s28   ;;  %s311_s15 = sadd.s32 1, %s1357_s27 }
   0xa   : > { %s308_s16 = ssub.s32 %s1361_s28, %s1473_s14  ;;  %p321_p0 = scmp.ne.s32.totalorder %s1357_s27, %s1353_s26 }
   0xb   : > { %p309_p1 = scmp.eq.s32.totalorder %s308_s16, 0  ;;  %p322_p2 = scmp.eq.s32.totalorder %s1469_s29, 1 }
   0xc   : > { %p327_p3 = scmp.ne.s32.totalorder %s1353_s26, %s1349_s25  ;;  %p328_p4 = scmp.eq.s32.totalorder %s1121_s30, 1 }
   0xd   : > { %s1484_s17 = scalar_select %p309_p1, %s1357_s27, %s311_s15  }
   0xe   : > { %p1486_p5 = por %p322_p2, %p321_p0  ;;  %p1490_p6 = por %p328_p4, %p327_p3 }
   0xf   : > { %p1124_p7 = scmp.ge.s32.totalorder %s1361_s28, 1  ;;  %p389_p8 = scmp.lt.s32.totalorder %s1361_s28, 3 }
  0x11   : > { %p390_p9 = pnand %p1124_p7, %p389_p8 }
  0x12   : > { %p432_p10 = scmp.lt.s32.totalorder (!%p390_p9), %s1469_s29, 1  ;;  %s1694_s0 = sld [smem:[#allocation7_spill]] (!%p390_p9) }
  0x13   : > { %393 = sbr.rel (%p390_p9) target bundleno = 1818 (0x71a), region = 72  ;;  %s1695_s3 = sld [smem:[#allocation10_spill]] (!%p390_p9) }
  0x14   : > { %s1696_s1 = sld [smem:[#allocation8_spill]] (!%p390_p9)  ;;  %s1364_s16 = smov (!%p390_p9), 72  }
  0x15   : > { %s1697_s2 = sld [smem:[#allocation9_spill]] (!%p390_p9)  ;;  %s1367_s22 = smov (!%p390_p9), 56  }
  0x16   : > { %s1368_s23 = smov (!%p390_p9), 112   ;;  %s1370_s30 = smov (!%p390_p9), 48  }
  0x17   : > { %s1371_s15 = smov (!%p390_p9), 96  }
  0x18   : > { %s433_s20 = scalar_select %p432_p10, %s1469_s29, 1  ;;  %vm438_vm0 = vcmask 261120   ;;  %v1363_v2 = vmov 32.0   ;;  %v1269_v32 = vld [vmem:[%s1678_s4] ss:$0 sm:$0xff]  ;;  %vm516_vm5 = vcmask 60416  }
  0x19   : > { %1275 = vrcp.f32 %v1363_v2  ;;  %v1200_v14 = vld [vmem:[%s1695_s3 + $0x8] sm:$0xff]  ;;  %v1199_v15 = vld [vmem:[%s1695_s3] sm:$0xff]  ;;  %vm586_vm6 = vcmask 64512   ;;  %vm706_vm7 = vcmask 1043456   ;;  %vm795_vm8 = vcmask 126016  }
  0x1a   : > { %s1126_s21 = sshll.u32 %s433_s20, 3  ;;  %508 = vmatpush.bf16.msra.mxu0 %v1200_v14  ;;  %v1267_v25 = vld [vmem:[%s1696_s1] ss:$0 sm:$0xff]  ;;  %s1365_s20 = smov 120   ;;  %vm802_vm9 = vcmask 191616   ;;  %vm809_vm10 = vcmask 257216  }
  0x1b   : > { %s435_s24 = scalar_lea.vmem %s1694_s0, %s1126_s21  ;;  %v1268_v28 = vld [vmem:[%s1697_s2] ss:$0 sm:$0xff]  ;;  %s1366_s21 = smov 88  }
  0x1c   : > { %v1501_v0 = vld [vmem:[%s435_s24] sm:$0xff]  ;;  %s1369_s24 = smov 80  }
  0x1d   : > { %v439_v1 = vsel %vm438_vm0, %v1501_v0, 0.0 }
  0x1e   : > { %440 = vadd.xlane.f32.xlu0 %v439_v1  ;;  %509 = vmatpush.bf16.msra.mxu0 %v1199_v15 }
  0x1f   : > { %v1276_v3 = vpop.eup %1275 }
  0x20   : > { %v443_v4 = vmul.f32 32.0, %v1276_v3  ;;  %vm447_vm1 = vweird.f32 %v1276_v3 }
  0x22   : > { %v444_v5 = vsub.f32 1.0, %v443_v4 }
  0x24   : > { %v445_v6 = vmul.f32 %v1276_v3, %v444_v5 }
  0x26   : > { %v446_v7 = vadd.f32 %v1276_v3, %v445_v6 }
  0x28   : > { %v1505_v8 = vsel %vm447_vm1, %v1276_v3, %v446_v7 }
  0x91   : > { %v441_v9 = vpop.xlane.xlu0 %440 }
  0x92   : > { %v449_v10 = vmul.f32 %v1505_v8, %v441_v9 }
  0x94   : > { %v450_v11 = vsub.f32 %v1501_v0, %v449_v10 }
  0x96   : > { %v451_v12 = vmul.f32 %v450_v11, %v450_v11 }
  0x98   : > { %v452_v13 = vsel %vm438_vm0, %v451_v12, 0.0 }
  0x99   : > { %453 = vadd.xlane.f32.xlu0 %v452_v13 }
 0x10c   : > { %v454_v16 = vpop.xlane.xlu0 %453 }
 0x10d   : > { %v455_v17 = vmul.f32 %v454_v16, %v1505_v8 }
 0x10f   : > { %v456_v18 = vadd.f32 1e-05, %v455_v17 }
 0x111   : > { %1277 = vrsqrt.f32 %v456_v18  ;;  %vm463_vm3 = vweird.f32 %v456_v18 }
 0x117   : > { %v1278_v19 = vpop.eup %1277 }
 0x118   : > { %v458_v20 = vmul.f32 %v1278_v19, %v456_v18  ;;  %vm464_vm2 = vweird.f32 %v1278_v19 }
 0x119   : > { %vm465_vm4 = vmor %vm463_vm3, %vm464_vm2 }
 0x11a   : > { %v459_v21 = vmul.f32 %v1278_v19, %v458_v20 }
 0x11c   : > { %v460_v22 = vmul.f32 0.5, %v459_v21 }
 0x11e   : > { %v461_v23 = vsub.f32 1.5, %v460_v22 }
 0x120   : > { %v462_v24 = vmul.f32 %v1278_v19, %v461_v23 }
 0x122   : > { %v466_v26 = vsel %vm465_vm4, %v1278_v19, %v462_v24 }
 0x123   : > { %v467_v27 = vmul.f32 %v466_v26, %v450_v11 }
 0x125   : > { %v472_v29 = vmul.f32 %v1267_v25, %v467_v27 }
 0x127   : > { %v477_v30 = vadd.f32 %v1268_v28, %v472_v29 }
 0x129   : > { %v478_v31 = vpack.c.bf16 %v477_v30, %v477_v30 }
 0x12b   : > { %1135 = vmatmul.msk.bf16.vlgmr.msra.gmra.mxu0 %vm438_vm0, %v478_v31 }
 0x1a8   : > { %v511_v33 = vpop.f32.mrf.mxu0 }
 0x1a9   : > { %v512_v34 = vadd.f32 %v1269_v32, %v511_v33 }
 0x1ab   : > { %v1527_v35 = vpack.c.bf16 %v512_v34, %v512_v34 }
 0x1ad   : > { %549 = vrot.lane.b32.xlu0 %v1527_v35, %s1364_s16  ;;  %519 = vrot.lane.b32.xlu2 %v1527_v35, %s1365_s20  ;;  %517 = vst.msk [vmem:[#allocation2] sm:$0xf] %vm516_vm5, %v1527_v35  ;;  %s1372_s16 = smov 104   ;;  %s1373_s20 = smov 40  }
 0x1ae   : > { %539 = vrot.lane.b32.xlu1 %v1527_v35, %s1366_s21  ;;  %s1374_s21 = smov 64  }
 0x1b0   : > { %v513_v36 = vpop.f32.mrf.mxu0 }
 0x1b4   : > { %v574_v45 = vld [vmem:[#allocation2] sm:$0xf] }
 0x1b5   : > { %559 = vrot.lane.b32.xlu0 %v1527_v35, %s1367_s22  ;;  %524 = vrot.lane.b32.xlu2 %v1527_v35, %s1368_s23  ;;  %s1375_s22 = smov 8   ;;  %s1376_s23 = smov 16  }
 0x1b6   : > { %544 = vrot.lane.b32.xlu1 %v1527_v35, %s1369_s24  ;;  %s1377_s24 = smov 24  }
 0x1bd   : > { %564 = vrot.lane.b32.xlu0 %v1527_v35, %s1370_s30  ;;  %534 = vrot.lane.b32.xlu2 %v1527_v35, %s1371_s15  ;;  %s429_s30 = sand.u32 1, %s1353_s26  }
 0x1be   : > { %529 = vrot.lane.b32.xlu1 %v1527_v35, %s1372_s16  ;;  %s1125_s15 = sshll.u32 %s429_s30, 3  ;;  %s1196_s16 = sshll.u32 %s1469_s29, 3 }
 0x1bf   : > { %s431_s0 = scalar_lea.vmem [#allocation4], %s1125_s15  ;;  %s1047_s29 = scalar_lea.sflag [#allocation5], %s429_s30 }
 0x1c0   : > { %s1059_s1 = sshll.u32 %s431_s0, 4  ;;  %s1319_s15 = scalar_lea.hbm %s1687_s13, 16  ;;  %s1060_s1 = int_to_ptr.vmem [resolvable:$true] %s1059_s1 }
 0x207   : > { %v520_v37 = vpop.permute.xlu2 %519 }
 0x208   : > { %523 = vst.msk [vmem:[#allocation2 + $0x4] sm:$0xf] %vm516_vm5, %v520_v37 }
 0x20f   : > { %v525_v38 = vpop.permute.xlu2 %524  ;;  %v575_v52 = vld [vmem:[#allocation2 + $0x4] sm:$0xf] }
 0x210   : > { %528 = vst.msk [vmem:[#allocation2 + $0x8] sm:$0xf] %vm516_vm5, %v525_v38 }
 0x217   : > { %v535_v39 = vpop.permute.xlu2 %534  ;;  %v576_v59 = vld [vmem:[#allocation2 + $0x8] sm:$0xf] }
 0x218   : > { %538 = vst.msk [vmem:[#allocation2 + $0x10] sm:$0xf] %vm516_vm5, %v535_v39 }
 0x21f   : > { %v550_v40 = vpop.permute.xlu0 %549  ;;  %v578_v41 = vld [vmem:[#allocation2 + $0x10] sm:$0xf] }
 0x220   : > { %553 = vst.msk [vmem:[#allocation2 + $0x1c] sm:$0xf] %vm516_vm5, %v550_v40  ;;  %v540_v42 = vpop.permute.xlu1 %539  ;;  %v591_v43 = vsel %vm586_vm6, %v578_v41, 0 }
 0x221   : > { %543 = vst.msk [vmem:[#allocation2 + $0x14] sm:$0xf] %vm516_vm5, %v540_v42  ;;  %600 = vmatpush.bf16.xpose.msra.mxu1 %v591_v43 }
 0x227   : > { %v560_v44 = vpop.permute.xlu0 %559  ;;  %v581_v46 = vld [vmem:[#allocation2 + $0x1c] sm:$0xf] }
 0x228   : > { %563 = vst.msk [vmem:[#allocation2 + $0x24] sm:$0xf] %vm516_vm5, %v560_v44  ;;  %v545_v47 = vpop.permute.xlu1 %544  ;;  %1136 = vmatmul.msk.bf16.vlgmr.msra.gmra.mxu1 %vm586_vm6, %v574_v45  ;;  %v579_v48 = vld [vmem:[#allocation2 + $0x14] sm:$0xf]  ;;  %v648_v49 = vsel %vm586_vm6, %v581_v46, 0 }
 0x229   : > { %548 = vst.msk [vmem:[#allocation2 + $0x18] sm:$0xf] %vm516_vm5, %v545_v47  ;;  %v610_v50 = vsel %vm586_vm6, %v579_v48, 0  ;;  %657 = vmatpush.bf16.xpose.msrb.mxu0 %v648_v49 }
 0x22a   : > { %619 = vmatpush.bf16.xpose.msra.mxu2 %v610_v50 }
 0x22f   : > { %v565_v51 = vpop.permute.xlu0 %564  ;;  %v583_v53 = vld [vmem:[#allocation2 + $0x24] sm:$0xf] }
 0x230   : > { %568 = vst.msk [vmem:[#allocation2 + $0x28] sm:$0xf] %vm516_vm5, %v565_v51  ;;  %v530_v54 = vpop.permute.xlu1 %529  ;;  %v580_v55 = vld [vmem:[#allocation2 + $0x18] sm:$0xf]  ;;  %v727_v56 = vsel %vm706_vm7, %v583_v53, 0 }
 0x231   : > { %533 = vst.msk [vmem:[#allocation2 + $0xc] sm:$0xf] %vm516_vm5, %v530_v54  ;;  %1137 = vmatmul.msk.bf16.vlgmr.msra.gmra.mxu2 %vm586_vm6, %v575_v52  ;;  %v629_v57 = vsel %vm586_vm6, %v580_v55, 0 }
 0x232   : > { %638 = vmatpush.bf16.xpose.msra.mxu3 %v629_v57  ;;  %736 = vmatpush.bf16.msrb.mxu2 %v727_v56 }
 0x237   : > { %v584_v58 = vld [vmem:[#allocation2 + $0x28] sm:$0xf] }
 0x238   : > { %v577_v60 = vld [vmem:[#allocation2 + $0xc] sm:$0xf]  ;;  %v746_v61 = vsel %vm706_vm7, %v584_v58, 0 }
 0x239   : > { %1138 = vmatmul.msk.bf16.vlgmr.msra.gmra.mxu3 %vm586_vm6, %v576_v59  ;;  %1139 = vmatmul.msk.bf16.vlgmr.msrb.gmra.mxu0 %vm586_vm6, %v577_v60 }
 0x23a   : > { %755 = vmatpush.bf16.msrb.mxu3 %v746_v61 }
 0x2a5   : > { %v602_v62 = vpop.f32.mrf.mxu1 }
 0x2a6   : > { %v663_v9 = vsel %vm586_vm6, %v602_v62, -inf }
 0x2ad   : > { %v604_v63 = vpop.f32.mrf.mxu1 }
 0x2b4   : > { %v621_v1 = vpop.f32.mrf.mxu2 }
 0x2b5   : > { %v666_v2 = vsel %vm586_vm6, %v621_v1, -inf }
 0x2b6   : > { %667 = vmax.xlane.f32.xlu1 %v666_v2  ;;  %v659_v3 = vpop.f32.mrf.mxu0 }
 0x2b7   : > { %v672_v4 = vsel %vm586_vm6, %v659_v3, -inf }
 0x2b8   : > { %673 = vmax.xlane.f32.xlu0 %v672_v4  ;;  %v1201_v4 = vld [vmem:[%s1679_s5] sm:$0xff] }
 0x2bc   : > { %v623_v5 = vpop.f32.mrf.mxu2  ;;  %v640_v6 = vpop.f32.mrf.mxu3 }
 0x2bd   : > { %v669_v7 = vsel %vm586_vm6, %v640_v6, -inf }
 0x2be   : > { %670 = vmax.xlane.f32.xlu2 %v669_v7  ;;  %v661_v10 = vpop.f32.mrf.mxu0  ;;  %664 = vmax.xlane.f32.xlu1 %v663_v9 }
 0x2bf   : > { %v1270_v10 = vld [vmem:[%s1680_s6] ss:$0 sm:$0xff] }
 0x2c4   : > { %v642_v11 = vpop.f32.mrf.mxu3 }
 0x2d6   : > { %569 = vrot.lane.b32.xlu2 %v1527_v35, %s1373_s20 }
 0x2d7   : > { %554 = vrot.lane.b32.xlu1 %v1527_v35, %s1374_s21 }
 0x329   : > { %v668_v12 = vpop.xlane.xlu1 %667 }
 0x32a   : > { %v676_v13 = vsub.f32 %v621_v1, %v668_v12 }
 0x32b   : > { %v674_v14 = vpop.xlane.xlu0 %673 }
 0x32c   : > { %v681_v15 = vmul.f32 1.442695, %v676_v13  ;;  %v678_v16 = vsub.f32 %v659_v3, %v674_v14  ;;  %v1202_v3 = vld [vmem:[%s1679_s5 + $0x8] sm:$0xff] }
 0x32e   : > { %1279 = vpow2.f32 %v681_v15  ;;  %v685_v17 = vmul.f32 1.442695, %v678_v16 }
 0x330   : > { %1281 = vpow2.f32 %v685_v17 }
 0x331   : > { %v671_v18 = vpop.xlane.xlu2 %670  ;;  %v665_v19 = vpop.xlane.xlu1 %664 }
 0x332   : > { %v677_v20 = vsub.f32 %v640_v6, %v671_v18  ;;  %v675_v23 = vsub.f32 %v602_v62, %v665_v19 }
 0x334   : > { %v1280_v21 = vpop.eup %1279  ;;  %v683_v22 = vmul.f32 1.442695, %v677_v20  ;;  %v679_v28 = vmul.f32 1.442695, %v675_v23 }
 0x335   : > { %v690_v24 = vsel %vm586_vm6, %v1280_v21, 0.0  ;;  %v700_v25 = vpack.c.bf16 %v1280_v21, %v1280_v21  ;;  %v1204_v21 = vld [vmem:[%s1683_s9 + $0x8] sm:$0xff] }
 0x336   : > { %v1282_v26 = vpop.eup %1281  ;;  %1283 = vpow2.f32 %v683_v22  ;;  %691 = vadd.xlane.f32.xlu2 %v690_v24  ;;  %911 = vmatpush.bf16.msra.mxu2 %v1204_v21 }
 0x337   : > { %1141 = vmatmul.msk.bf16.vlgmr.msrb.gmra.mxu2 %vm586_vm6, %v700_v25  ;;  %v696_v27 = vsel %vm586_vm6, %v1282_v26, 0.0  ;;  %1285 = vpow2.f32 %v679_v28  ;;  %v702_v36 = vpack.c.bf16 %v1282_v26, %v1282_v26 }
 0x338   : > { %697 = vadd.xlane.f32.xlu1 %v696_v27 }
 0x339   : > { %v570_v29 = vpop.permute.xlu2 %569 }
 0x33a   : > { %573 = vst.msk [vmem:[#allocation2 + $0x2c] sm:$0xf] %vm516_vm5, %v570_v29 }
 0x33c   : > { %v1284_v30 = vpop.eup %1283 }
 0x33d   : > { %v693_v31 = vsel %vm586_vm6, %v1284_v30, 0.0  ;;  %v701_v32 = vpack.c.bf16 %v1284_v30, %v1284_v30  ;;  %v1286_v34 = vpop.eup %1285 }
 0x33e   : > { %694 = vadd.xlane.f32.xlu0 %v693_v31  ;;  %v687_v37 = vsel %vm586_vm6, %v1286_v34, 0.0  ;;  %v699_v41 = vpack.c.bf16 %v1286_v34, %v1286_v34  ;;  %v1271_v31 = vld [vmem:[%s1681_s7] ss:$0 sm:$0xff] }
 0x33f   : > { %1142 = vmatmul.msk.bf16.vlgmr.msrb.gmra.mxu3 %vm586_vm6, %v701_v32 }
 0x341   : > { %v585_v33 = vld [vmem:[#allocation2 + $0x2c] sm:$0xf] }
 0x342   : > { %v765_v35 = vsel %vm706_vm7, %v585_v33, 0 }
 0x343   : > { %774 = vmatpush.bf16.msra.mxu0 %v765_v35 }
 0x346   : > { %1143 = vmatmul.msk.bf16.vlgmr.msra.gmra.mxu0 %vm586_vm6, %v702_v36  ;;  %688 = vadd.xlane.f32.xlu0 %v687_v37  ;;  %v1212_v37 = vld [vmem:[%s1685_s11 + $0x38] sm:$0xff] }
 0x347   : > { %1031 = vmatpush.bf16.msra.mxu3 %v1212_v37 }
 0x349   : > { %v555_v38 = vpop.permute.xlu1 %554 }
 0x34a   : > { %558 = vst.msk [vmem:[#allocation2 + $0x20] sm:$0xf] %vm516_vm5, %v555_v38  ;;  %v1211_v38 = vld [vmem:[%s1685_s11 + $0x30] sm:$0xff] }
 0x34b   : > { %1032 = vmatpush.bf16.msra.mxu3 %v1211_v38 }
 0x351   : > { %v582_v39 = vld [vmem:[#allocation2 + $0x20] sm:$0xf] }
 0x352   : > { %v708_v40 = vsel %vm706_vm7, %v582_v39, 0  ;;  %v1273_v39 = vld [vmem:[%s1684_s10] ss:$0 sm:$0xff] }
 0x353   : > { %717 = vmatpush.bf16.msrb.mxu1 %v708_v40 }
 0x356   : > { %1140 = vmatmul.msk.bf16.vlgmr.msrb.gmra.mxu1 %vm586_vm6, %v699_v41  ;;  %v1210_v41 = vld [vmem:[%s1685_s11 + $0x28] sm:$0xff] }
 0x357   : > { %841 = vmatpush.bf16.msra.mxu1 %v1202_v3  ;;  %1033 = vmatpush.bf16.msra.mxu3 %v1210_v41 }
 0x35b   : > { %842 = vmatpush.bf16.msra.mxu1 %v1201_v4 }
 0x3a9   : > { %v692_v42 = vpop.xlane.xlu2 %691 }
 0x3aa   : > { %1287 = vrcp.f32 %v692_v42 }
 0x3ab   : > { %v698_v45 = vpop.xlane.xlu1 %697 }
 0x3b0   : > { %v1288_v44 = vpop.eup %1287 }
 0x3b1   : > { %v695_v43 = vpop.xlane.xlu0 %694 }
 0x3b2   : > { %1289 = vrcp.f32 %v695_v43 }
 0x3b3   : > { %1291 = vrcp.f32 %v698_v45 }
 0x3b8   : > { %v1290_v49 = vpop.eup %1289 }
 0x3b9   : > { %v1292_v52 = vpop.eup %1291  ;;  %v689_v58 = vpop.xlane.xlu0 %688 }
 0x3ba   : > { %v738_v46 = vpop.f32.mrf.mxu2  ;;  %1293 = vrcp.f32 %v689_v58  ;;  %v1206_v58 = vld [vmem:[%s1685_s11 + $0x8] sm:$0xff] }
 0x3bb   : > { %v785_v47 = vmul.f32 %v1288_v44, %v738_v46  ;;  %v1209_v44 = vld [vmem:[%s1685_s11 + $0x20] sm:$0xff] }
 0x3bc   : > { %1034 = vmatpush.bf16.msra.mxu3 %v1209_v44 }
 0x3bd   : > { %v790_v48 = vpack.c.bf16 %v785_v47, %v785_v47 }
 0x3bf   : > { %792 = vrot.lane.b32.xlu0 %v790_v48, %s1375_s22  ;;  %v1208_v48 = vld [vmem:[%s1685_s11 + $0x18] sm:$0xff] }
 0x3c0   : > { %v1294_v61 = vpop.eup %1293  ;;  %1035 = vmatpush.bf16.msra.mxu3 %v1208_v48 }
 0x3c2   : > { %v740_v50 = vpop.f32.mrf.mxu2  ;;  %v757_v51 = vpop.f32.mrf.mxu3 }
 0x3c3   : > { %v786_v53 = vmul.f32 %v1290_v49, %v757_v51  ;;  %v776_v54 = vpop.f32.mrf.mxu0 }
 0x3c4   : > { %v787_v55 = vmul.f32 %v1292_v52, %v776_v54 }
 0x3c5   : > { %v797_v56 = vpack.c.bf16 %v786_v53, %v786_v53  ;;  %v1207_v53 = vld [vmem:[%s1685_s11 + $0x10] sm:$0xff] }
 0x3c6   : > { %v804_v57 = vpack.c.bf16 %v787_v55, %v787_v55  ;;  %1036 = vmatpush.bf16.msra.mxu3 %v1207_v53 }
 0x3c7   : > { %799 = vrot.lane.b32.xlu0 %v797_v56, %s1376_s23 }
 0x3c8   : > { %806 = vrot.lane.b32.xlu2 %v804_v57, %s1377_s24  ;;  %s1057_s24 = scalar_lea.hbm %s1687_s13, %s1196_s16 }
 0x3c9   : > { %s1061_s2 = sshll.u32 %s1057_s24, 4  ;;  %s1062_s2 = int_to_ptr.hbm [resolvable:$true] %s1061_s2 }
 0x3ca   : > { %v759_v59 = vpop.f32.mrf.mxu3  ;;  %1037 = vmatpush.bf16.msra.mxu3 %v1206_v58  ;;  %s1313_s3 = sshra.s32 %s1062_s2, 4  ;;  %s1314_s3 = int_to_ptr.hbm [resolvable:$true] %s1313_s3 }
 0x3cb   : > { %v778_v60 = vpop.f32.mrf.mxu0  ;;  %s1315_s20 = scalar_lea.hbm %s1314_s3, 8  ;;  %p1320_p0 = scmp.lt.s32.totalorder %s1314_s3, %s1687_s13 }
 0x3cc   : > { %p1316_p11 = scmp.ne.s32.totalorder %s1314_s3, %s1315_s20  ;;  %p1321_p1 = scmp.lt.s32.totalorder %s1319_s15, %s1315_s20 }
 0x3ce   : > { %p1317_p12 = pnand %p1316_p11, %p1486_p5  ;;  %p1322_p2 = por %p1321_p1, %p1320_p0 }
 0x3d0   : > { %p1318_p13 = pneg %p1317_p12 }
 0x3d2   : > { %p1323_p3 = pnand %p1322_p2, %p1318_p13 }
 0x3d3   : > { %v719_v62 = vpop.f32.mrf.mxu1 }
 0x3d4   : > { %v784_v63 = vmul.f32 %v1294_v61, %v719_v62  ;;  %v1205_v62 = vld [vmem:[%s1685_s11] sm:$0xff] }
 0x3d5   : > { %1038 = vmatpush.bf16.msra.mxu3 %v1205_v62 }
 0x3d6   : > { %v788_v1 = vpack.c.bf16 %v784_v63, %v784_v63 }
 0x3d8   : > { %789 = vst.msk [vmem:[#allocation3] sm:$0xf] %vm516_vm5, %v788_v1 }
 0x3db   : > { %v721_v2 = vpop.f32.mrf.mxu1 }
 0x422   : > { %v807_v7 = vpop.permute.xlu2 %806 }
 0x431   : > { %v793_v5 = vpop.permute.xlu0 %792 }
 0x432   : > { %796 = vst.msk [vmem:[#allocation3] sm:$0xf] %vm795_vm8, %v793_v5 }
 0x439   : > { %v800_v6 = vpop.permute.xlu0 %799 }
 0x43a   : > { %803 = vst.msk [vmem:[#allocation3] sm:$0xf] %vm802_vm9, %v800_v6 }
 0x43b   : > { %810 = vst.msk [vmem:[#allocation3] sm:$0xf] %vm809_vm10, %v807_v7 }
 0x442   : > { %v811_v9 = vld [vmem:[#allocation3] sm:$0xf] }
 0x443   : > { %1152 = vmatmul.msk.bf16.vlgmr.msra.gmra.mxu1 %vm438_vm0, %v811_v9 }
 0x4c0   : > { %v844_v11 = vpop.f32.mrf.mxu1 }
 0x4c1   : > { %v845_v12 = vadd.f32 %v1270_v10, %v844_v11 }
 0x4c3   : > { %v1589_v13 = vadd.f32 %v845_v12, %v1501_v0  ;;  %v1203_v0 = vld [vmem:[%s1683_s9] sm:$0xff] }
 0x4c4   : > { %912 = vmatpush.bf16.msra.mxu2 %v1203_v0 }
 0x4c5   : > { %v849_v14 = vsel %vm438_vm0, %v1589_v13, 0.0 }
 0x4c6   : > { %850 = vadd.xlane.f32.xlu0 %v849_v14 }
 0x4c8   : > { %v846_v15 = vpop.f32.mrf.mxu1 }
 0x539   : > { %v851_v16 = vpop.xlane.xlu0 %850 }
 0x53a   : > { %v852_v17 = vmul.f32 %v851_v16, %v1505_v8 }
 0x53c   : > { %v853_v18 = vsub.f32 %v1589_v13, %v852_v17 }
 0x53e   : > { %v854_v19 = vmul.f32 %v853_v18, %v853_v18 }
 0x540   : > { %v855_v20 = vsel %vm438_vm0, %v854_v19, 0.0 }
 0x541   : > { %856 = vadd.xlane.f32.xlu1 %v855_v20 }
 0x5b4   : > { %v857_v22 = vpop.xlane.xlu1 %856 }
 0x5b5   : > { %v858_v23 = vmul.f32 %v857_v22, %v1505_v8  ;;  %v1272_v8 = vld [vmem:[%s1682_s8] ss:$0 sm:$0xff] }
 0x5b7   : > { %v859_v24 = vadd.f32 1e-05, %v858_v23 }
 0x5b9   : > { %1295 = vrsqrt.f32 %v859_v24  ;;  %vm866_vm12 = vweird.f32 %v859_v24 }
 0x5bf   : > { %v1296_v25 = vpop.eup %1295 }
 0x5c0   : > { %v861_v26 = vmul.f32 %v1296_v25, %v859_v24  ;;  %vm867_vm11 = vweird.f32 %v1296_v25 }
 0x5c1   : > { %vm868_vm13 = vmor %vm866_vm12, %vm867_vm11 }
 0x5c2   : > { %v862_v27 = vmul.f32 %v1296_v25, %v861_v26 }
 0x5c4   : > { %v863_v28 = vmul.f32 0.5, %v862_v27  ;;  %v1274_v27 = vld [vmem:[%s1686_s12] ss:$0 sm:$0xff] }
 0x5c6   : > { %v864_v29 = vsub.f32 1.5, %v863_v28 }
 0x5c8   : > { %v865_v30 = vmul.f32 %v1296_v25, %v864_v29 }
 0x5ca   : > { %v869_v32 = vsel %vm868_vm13, %v1296_v25, %v865_v30 }
 0x5cb   : > { %v870_v33 = vmul.f32 %v869_v32, %v853_v18 }
 0x5cd   : > { %v875_v34 = vmul.f32 %v1271_v31, %v870_v33 }
 0x5cf   : > { %v880_v35 = vadd.f32 %v1272_v8, %v875_v34 }
 0x5d1   : > { %v881_v36 = vpack.c.bf16 %v880_v35, %v880_v35 }
 0x5d3   : > { %1161 = vmatmul.msk.bf16.vlgmr.msra.gmra.mxu2 %vm438_vm0, %v881_v36 }
 0x656   : > { %v914_v40 = vpop.f32.mrf.mxu2 }
 0x657   : > { %v915_v42 = vadd.f32 %v1273_v39, %v914_v40 }
 0x659   : > { %v919_v43 = vmul.f32 0.70710677, %v915_v42  ;;  %v918_v23 = vmul.f32 0.5, %v915_v42 }
 0x65b   : > { %v920_v45 = vmul.f32 %v919_v43, %v919_v43 }
 0x65d   : > { %v921_v46 = vmin.f32 %v920_v45, 16.0 }
 0x65e   : > { %v916_v47 = vpop.f32.mrf.mxu2 }
 0x65f   : > { %v922_v49 = vmul.f32 2.1237322e-06, %v921_v46  ;;  %v933_v50 = vmul.f32 3.8918573e-05, %v921_v46 }
 0x661   : > { %v923_v51 = vadd.f32 0.00028619796, %v922_v49  ;;  %v934_v52 = vadd.f32 0.001143296, %v933_v50 }
 0x663   : > { %v924_v54 = vmul.f32 %v923_v51, %v921_v46  ;;  %v935_v55 = vmul.f32 %v934_v52, %v921_v46 }
 0x665   : > { %v936_v56 = vadd.f32 0.014752088, %v935_v55  ;;  %v925_v57 = vadd.f32 0.0036580483, %v924_v54 }
 0x667   : > { %v937_v59 = vmul.f32 %v936_v56, %v921_v46  ;;  %v926_v61 = vmul.f32 %v925_v57, %v921_v46 }
 0x669   : > { %v938_v60 = vadd.f32 0.112945676, %v937_v59  ;;  %v927_v2 = vadd.f32 0.05243302, %v926_v61 }
 0x66b   : > { %v939_v63 = vmul.f32 %v938_v60, %v921_v46  ;;  %v928_v5 = vmul.f32 %v927_v2, %v921_v46 }
 0x66d   : > { %v940_v1 = vadd.f32 0.4994258, %v939_v63  ;;  %v929_v6 = vadd.f32 0.18741608, %v928_v5 }
 0x66f   : > { %v941_v3 = vmul.f32 %v940_v1, %v921_v46  ;;  %v930_v9 = vmul.f32 %v929_v6, %v921_v46 }
 0x671   : > { %v942_v4 = vadd.f32 1.0, %v941_v3  ;;  %v931_v14 = vadd.f32 1.1283791, %v930_v9 }
 0x673   : > { %1297 = vrcp.f32 %v942_v4  ;;  %v954_v12 = vand.u32 2147483648, %v942_v4  ;;  %v952_v16 = vand.u32 2147483647, %v942_v4  ;;  %vm948_vm15 = vweird.f32 %v942_v4 }
 0x674   : > { %v932_v19 = vmul.f32 %v931_v14, %v919_v43 }
 0x675   : > { %v955_v18 = vor.u32 1.1754944e-38, %v954_v12  ;;  %vm953_vm2 = vcmp.eq.f32.partialorder %v952_v16, 8.507059e+37 }
 0x679   : > { %v1298_v7 = vpop.eup %1297 }
 0x67a   : > { %v944_v10 = vmul.f32 %v1298_v7, %v942_v4  ;;  %vm949_vm14 = vweird.f32 %v1298_v7 }
 0x67b   : > { %vm950_vm1 = vmor %vm948_vm15, %vm949_vm14 }
 0x67c   : > { %v945_v11 = vsub.f32 1.0, %v944_v10 }
 0x67e   : > { %v946_v15 = vmul.f32 %v1298_v7, %v945_v11 }
 0x680   : > { %v947_v17 = vadd.f32 %v1298_v7, %v946_v15 }
 0x682   : > { %v951_v20 = vsel %vm950_vm1, %v1298_v7, %v947_v17 }
 0x683   : > { %v956_v21 = vsel %vm953_vm2, %v955_v18, %v951_v20 }
 0x684   : > { %v957_v0 = vmul.f32 %v956_v21, %v932_v19 }
 0x686   : > { %v1162_v22 = vclamps-f32 %v957_v0, 1.0 }
 0x688   : > { %v960_v24 = vadd.f32 1.0, %v1162_v22 }
 0x68a   : > { %v961_v25 = vmul.f32 %v960_v24, %v918_v23 }
 0x68c   : > { %v962_v26 = vpack.c.bf16 %v961_v25, %v961_v25 }
 0x68e   : > { %1039 = vmatmul.bf16.vlgmr.msra.gmra.mxu3 %v962_v26 }
 0x711   : > { %v1040_v28 = vpop.f32.mrf.mxu3 }
 0x712   : > { %v1041_v29 = vadd.f32 %v1274_v27, %v1040_v28 }
 0x714   : > { %v1044_v30 = vadd.f32 %v1041_v29, %v1589_v13 }
 0x716   : > { %1045 = vst.msk [vmem:[%s431_s0] sm:$0xff] %vm438_vm0, %v1044_v30 }
 0x717   : > { %1326 = shalt.err (!%p1323_p3)
}
 0x718   : > { %1213 = dma.vmem_to_hbm [thread:$0]  (%p1486_p5), %s1060_s1, 128, %s1062_s2, %s1047_s29  }
 0x719   : > { %v1042_v13 = vpop.f32.mrf.mxu3 }
 0x71a PF: > { %p1219_p4 = scmp.ge.s32.totalorder %s1361_s28, 2  ;;  %s1073_s0 = sand.u32 1, %s1349_s25  }
 0x71b   : > { %s1074_s30 = scalar_lea.sflag [#allocation5], %s1073_s0 }
 0x71c   : > { %p1216_p7 = pnand %p1219_p4, %p1490_p6 }
 0x71e   : > { %p1217_p8 = pneg %p1216_p7 }
 0x720   : > { %1344 = dma.done.wait (%p1217_p8), %s1074_s30, 128  }
 0x721   : > { %1346 = vsyncadd (%p1217_p8), %s1074_s30, 4294967168  ;;  %p23_p9 = scmp.ge.s32.totalorder %s1473_s14, 4   ;;  %s1698_s25 = smov %s1353_s26 }
 0x722   : > { %s1699_s26 = smov %s1357_s27  ;;  %s1700_s27 = smov %s1484_s17 }
 0x723   : > { %s1701_s28 = smov %s1473_s14  ;;  %25 = sbr.rel (!%p23_p9) target bundleno = 8 (0x8), region = 118 }
 0x728   :  { %1080 = vsyncpa [#allocation5], 1 }
 0x729   :  { %1082 = vsyncpa [#allocation5 + $0x1], 1 }

</bundles_post_ra>
